<compile_context>
chip_gen: v6e
topology: v6e:2x2x1
jax: 0.10.0
libtpu: 0.0.40
codegen_flags: <defaults>
</compile_context>

<pallas_src>
import math

import jax
import jax.numpy as jnp
from jax.experimental import pallas as pl
from jax.experimental.pallas import tpu as pltpu


# ----------------------------------------------------------------------------
# Parameter construction (mirrors nn.init.xavier_uniform_ + constant bias 0.01)
# ----------------------------------------------------------------------------
def _xavier_uniform(key, fan_out, fan_in, dtype=jnp.float32):
    bound = math.sqrt(6.0 / (fan_in + fan_out))
    return jax.random.uniform(key, (fan_out, fan_in), dtype=dtype,
                              minval=-bound, maxval=bound)


_LAYER_DIMS = [
    (None, 256),   # embedding_l1 (in = input_size)
    (256, 128),    # embedding_l2
    (128, 64),     # embedding_l3
    (64, 80),      # feature_l1
    (80, 50),      # feature_l2
    (50, 30),      # feature_l3
    (64, 60),      # score_l1
    (60, 50),      # score_l2
    (50, 1),       # score_l3
]


def make_params(input_size, key):
    """Original (unpadded) params in kernel layout: W [in, out], b [1, out]."""
    dims = [(input_size if d_in is None else d_in, d_out)
            for d_in, d_out in _LAYER_DIMS]
    keys = jax.random.split(key, len(dims))
    weights, biases = [], []
    for k, (d_in, d_out) in zip(keys, dims):
        w = _xavier_uniform(k, d_out, d_in)          # torch [out, in]
        weights.append(jnp.asarray(w.T))             # kernel [in, out]
        biases.append(jnp.full((1, d_out), 0.01, dtype=jnp.float32))
    return weights, biases


def pack_params(weights, biases, compute_dtype=jnp.bfloat16):
    """Pad layer widths to multiples of 128, fuse the two heads, pack biases.

    Returns
      packed_w : 6 bf16 weight slabs
                 W1 [in,256], W2 [256,128], W3 [128,128],
                 Wh1 [128,256] (feature_l1 in lanes 0..79 | score_l1 in 128..187),
                 Wh2 [256,256] block-diagonal (feature 0..49 | score 128..177),
                 Wh3 [256,128] (feature_l3 -> lanes 0..29, score_l3 -> lane 31).
      bias_all : [8, 256] f32, rows 0..5 hold the per-layer (padded) biases.
    """
    w1, w2, w3, wf1, wf2, wf3, ws1, ws2, ws3 = weights
    b1, b2, b3, bf1, bf2, bf3, bs1, bs2, bs3 = biases

    W1 = w1                                          # [in, 256]
    W2 = w2                                          # [256, 128]
    W3 = jnp.zeros((128, 128), jnp.float32).at[:, :64].set(w3)   # 128 -> 64(pad 128)

    Wh1 = jnp.zeros((128, 256), jnp.float32)         # shared-LHS head layer 1
    Wh1 = Wh1.at[:64, 0:80].set(wf1)
    Wh1 = Wh1.at[:64, 128:188].set(ws1)

    Wh2 = jnp.zeros((256, 256), jnp.float32)         # block-diagonal head layer 2
    Wh2 = Wh2.at[0:80, 0:50].set(wf2)
    Wh2 = Wh2.at[128:188, 128:178].set(ws2)

    Wh3 = jnp.zeros((256, 128), jnp.float32)         # final head layer, 128 lanes out
    Wh3 = Wh3.at[0:50, 0:30].set(wf3)                # feature_l3 -> lanes 0..29
    Wh3 = Wh3.at[128:178, 31:32].set(ws3)            # score_l3   -> lane 31

    packed_w = [w.astype(compute_dtype) for w in (W1, W2, W3, Wh1, Wh2, Wh3)]

    bias_all = jnp.zeros((8, 256), jnp.float32)
    bias_all = bias_all.at[0, 0:256].set(b1[0])
    bias_all = bias_all.at[1, 0:128].set(b2[0])
    bias_all = bias_all.at[2, 0:64].set(b3[0])
    bias_all = bias_all.at[3, 0:80].set(bf1[0])
    bias_all = bias_all.at[3, 128:188].set(bs1[0])
    bias_all = bias_all.at[4, 0:50].set(bf2[0])
    bias_all = bias_all.at[4, 128:178].set(bs2[0])
    bias_all = bias_all.at[5, 0:30].set(bf3[0])
    bias_all = bias_all.at[5, 31].set(bs3[0, 0])
    return packed_w, bias_all


# ----------------------------------------------------------------------------
# Pallas kernel: full forward for one batch tile.
# ----------------------------------------------------------------------------
def attention_module_kernel(x_ref,
                            w1_ref, w2_ref, w3_ref,
                            wh1_ref, wh2_ref, wh3_ref,
                            bias_ref, out_ref):
    cdt = w1_ref.dtype   # bf16 compute dtype for the MXU

    def linear(x, w_ref, b, relu):
        y = jnp.dot(x.astype(cdt), w_ref[...],
                    preferred_element_type=jnp.float32)
        y = y + b                      # f32 bias add
        if relu:
            y = jnp.maximum(y, 0.0)    # f32 ReLU
        return y

    b = bias_ref[...]                                 # [8, 256] f32
    x = x_ref[...]                                    # already bf16

    # shared embedding trunk
    a = linear(x, w1_ref, b[0:1, :], relu=True)        # [T, 256]
    a = linear(a, w2_ref, b[1:2, 0:128], relu=True)    # [T, 128]
    a = linear(a, w3_ref, b[2:3, 0:128], relu=True)    # [T, 128] (64 valid)

    # fused feature/score heads (feature in lanes 0..127, score in 128..255)
    h = linear(a, wh1_ref, b[3:4, :], relu=True)       # [T, 256]
    h = linear(h, wh2_ref, b[4:5, :], relu=True)       # [T, 256]
    h = linear(h, wh3_ref, b[5:6, 0:128], relu=False)  # [T, 128] (feature 0..29, score @31)

    out_ref[...] = h.astype(out_ref.dtype)


# ----------------------------------------------------------------------------
# Wrapper
# ----------------------------------------------------------------------------
def _round_up(v, m):
    return ((v + m - 1) // m) * m


def _num_tensorcores():
    """Best-effort: 2 for v7x (dual-TC per chip), else 1."""
    try:
        kind = jax.devices()[0].device_kind.lower()
        if "v7" in kind:
            return 2
    except Exception:
        pass
    return 1


def _vmem_footprint_bytes(tm, input_size, packed_w):
    x_bytes = tm * input_size * 2            # bf16 input tile
    out_bytes = tm * 128 * 4                 # f32 output tile
    w_bytes = sum(w.shape[0] * w.shape[1] * 2 for w in packed_w)
    bias_bytes = 8 * 256 * 4
    return 2 * (x_bytes + out_bytes + w_bytes + bias_bytes)   # double-buffered


def attention_module_forward(x, packed_w, bias_all, *, tile_m=1024):
    n, input_size = x.shape

    # Halve input DMA bytes; layer-1 in-kernel cast becomes a no-op.
    x = x.astype(packed_w[0].dtype)

    # Batch tile selection: one grid step for small batches, big tiles otherwise.
    tm = max(8, _round_up(tile_m, 8))
    if n <= tm:
        tm = max(8, _round_up(n, 8))

    # VMEM budget guard (matters only if tile_m / input_size are scaled up).
    VMEM_SOFT_CAP = 28 << 20   # stay under v7x's 32 MiB scoped default
    while tm > 256 and _vmem_footprint_bytes(tm, input_size, packed_w) > VMEM_SOFT_CAP:
        tm //= 2
        tm = max(8, _round_up(tm, 8))

    steps = pl.cdiv(n, tm)
    num_tc = _num_tensorcores()
    if steps > 1 and num_tc > 1:
        steps = _round_up(steps, num_tc)   # even split across v7x TensorCores
    n_pad = steps * tm
    if n_pad != n:
        x = jnp.pad(x, ((0, n_pad - n), (0, 0)))
    grid = (steps,)

    in_specs = [
        pl.BlockSpec((tm, input_size), lambda i: (i, 0)),     # x (batch-tiled, bf16)
        pl.BlockSpec(packed_w[0].shape, lambda i: (0, 0)),    # W1
        pl.BlockSpec(packed_w[1].shape, lambda i: (0, 0)),    # W2
        pl.BlockSpec(packed_w[2].shape, lambda i: (0, 0)),    # W3
        pl.BlockSpec(packed_w[3].shape, lambda i: (0, 0)),    # Wh1
        pl.BlockSpec(packed_w[4].shape, lambda i: (0, 0)),    # Wh2
        pl.BlockSpec(packed_w[5].shape, lambda i: (0, 0)),    # Wh3
        pl.BlockSpec(bias_all.shape, lambda i: (0, 0)),       # packed biases
    ]
    out_shape = jax.ShapeDtypeStruct((n_pad, 128), jnp.float32)
    out_specs = pl.BlockSpec((tm, 128), lambda i: (i, 0))

    compiler_kwargs = {"dimension_semantics": ("parallel",)}
    footprint = _vmem_footprint_bytes(tm, input_size, packed_w)
    if footprint > (12 << 20):
        compiler_kwargs["vmem_limit_bytes"] = min(int(footprint * 1.5), 96 << 20)

    out = pl.pallas_call(
        attention_module_kernel,
        out_shape=out_shape,
        grid_spec=pltpu.PrefetchScalarGridSpec(
            num_scalar_prefetch=0,
            grid=grid,
            in_specs=in_specs,
            out_specs=out_specs,
        ),
        compiler_params=pltpu.CompilerParams(**compiler_kwargs),
    )(x, *packed_w, bias_all)

    feature = out[:n, 0:30]
    score = out[:n, 31:32]
    return feature, score


# Pure-JAX reference (original unpadded/unfused weights, same bf16 MXU inputs).
def reference_forward(x, weights, biases, compute_dtype=jnp.bfloat16):
    def lin(x, w, b, relu):
        y = jnp.dot(x.astype(compute_dtype), w.astype(compute_dtype),
                    preferred_element_type=jnp.float32) + b
        return jnp.maximum(y, 0.0) if relu else y

    a = lin(x, weights[0], biases[0], True)
    a = lin(a, weights[1], biases[1], True)
    a = lin(a, weights[2], biases[2], True)
    f = lin(a, weights[3], biases[3], True)
    f = lin(f, weights[4], biases[4], True)
    f = lin(f, weights[5], biases[5], False)
    s = lin(a, weights[6], biases[6], True)
    s = lin(s, weights[7], biases[7], True)
    s = lin(s, weights[8], biases[8], False)
    return f, s


if __name__ == "__main__":
    key = jax.random.PRNGKey(0)
    k_param, k_x = jax.random.split(key)

    input_size = 32   # "hidden=32" sized synthetic input features
    batch = 16

    weights, biases = make_params(input_size, k_param)
    packed_w, bias_all = pack_params(weights, biases)
    x = jax.random.normal(k_x, (batch, input_size), dtype=jnp.float32)

    feature, score = attention_module_forward(x, packed_w, bias_all)
    feature, score = jax.block_until_ready((feature, score))

    f_ref, s_ref = reference_forward(x, weights, biases)
    assert feature.shape == (batch, 30)
    assert score.shape == (batch, 1)
    assert jnp.allclose(feature, f_ref, atol=1e-3, rtol=1e-3), \
        float(jnp.max(jnp.abs(feature - f_ref)))
    assert jnp.allclose(score, s_ref, atol=1e-3, rtol=1e-3), \
        float(jnp.max(jnp.abs(score - s_ref)))

    print("KERNEL_OK")
</pallas_src>

<mosaic_0001>
module attributes {stable_mosaic.version = 11 : i64} {
  func.func @attention_module_kernel(%arg0: i32, %arg1: memref<16x32xbf16, #tpu.memory_space<vmem>>, %arg2: memref<32x256xbf16, #tpu.memory_space<vmem>>, %arg3: memref<256x128xbf16, #tpu.memory_space<vmem>>, %arg4: memref<128x128xbf16, #tpu.memory_space<vmem>>, %arg5: memref<128x256xbf16, #tpu.memory_space<vmem>>, %arg6: memref<256x256xbf16, #tpu.memory_space<vmem>>, %arg7: memref<256x128xbf16, #tpu.memory_space<vmem>>, %arg8: memref<8x256xf32, #tpu.memory_space<vmem>>, %arg9: memref<16x128xf32, #tpu.memory_space<vmem>>) attributes {dimension_semantics = [#tpu.dimension_semantics<parallel>], iteration_bounds = array<i64: 1>, scalar_prefetch = 0 : i64, scratch_operands = 0 : i64, tpu.core_type = #tpu.core_type<tc>, window_params = [{transform_indices = @transform_0, window_bounds = array<i64: 16, 32>}, {pipeline_mode = #tpu.pipeline_mode<synchronous>, transform_indices = @transform_1, window_bounds = array<i64: 32, 256>}, {pipeline_mode = #tpu.pipeline_mode<synchronous>, transform_indices = @transform_2, window_bounds = array<i64: 256, 128>}, {pipeline_mode = #tpu.pipeline_mode<synchronous>, transform_indices = @transform_3, window_bounds = array<i64: 128, 128>}, {pipeline_mode = #tpu.pipeline_mode<synchronous>, transform_indices = @transform_4, window_bounds = array<i64: 128, 256>}, {pipeline_mode = #tpu.pipeline_mode<synchronous>, transform_indices = @transform_5, window_bounds = array<i64: 256, 256>}, {pipeline_mode = #tpu.pipeline_mode<synchronous>, transform_indices = @transform_6, window_bounds = array<i64: 256, 128>}, {pipeline_mode = #tpu.pipeline_mode<synchronous>, transform_indices = @transform_7, window_bounds = array<i64: 8, 256>}, {transform_indices = @transform_8, window_bounds = array<i64: 16, 128>}]} {
    %c0 = arith.constant 0 : index
    %c0_0 = arith.constant 0 : index
    %0 = vector.load %arg8[%c0, %c0_0] : memref<8x256xf32, #tpu.memory_space<vmem>>, vector<8x256xf32>
    %c0_1 = arith.constant 0 : index
    %c0_2 = arith.constant 0 : index
    %1 = vector.load %arg1[%c0_1, %c0_2] : memref<16x32xbf16, #tpu.memory_space<vmem>>, vector<16x32xbf16>
    %2 = vector.extract_strided_slice %0 {offsets = [0, 0], sizes = [1, 256], strides = [1, 1]} : vector<8x256xf32> to vector<1x256xf32>
    %c0_3 = arith.constant 0 : index
    %c0_4 = arith.constant 0 : index
    %3 = vector.load %arg2[%c0_3, %c0_4] : memref<32x256xbf16, #tpu.memory_space<vmem>>, vector<32x256xbf16>
    %cst = arith.constant dense<0.000000e+00> : vector<16x256xf32>
    %4 = tpu.matmul %1, %3, %cst {dimension_numbers = #tpu.dot_dimension_numbers<[1], [0], [0], [1], [0, 0, 1, 1], [], []>} : vector<16x32xbf16>, vector<32x256xbf16>, vector<16x256xf32> -> vector<16x256xf32>
    %5 = vector.broadcast %2 : vector<1x256xf32> to vector<16x256xf32>
    %6 = arith.addf %4, %5 : vector<16x256xf32>
    %cst_5 = arith.constant 0.000000e+00 : f32
    %7 = vector.broadcast %cst_5 : f32 to vector<16x256xf32>
    %8 = arith.maximumf %6, %7 : vector<16x256xf32>
    %9 = vector.extract_strided_slice %0 {offsets = [1, 0], sizes = [1, 128], strides = [1, 1]} : vector<8x256xf32> to vector<1x128xf32>
    %10 = arith.truncf %8 : vector<16x256xf32> to vector<16x256xbf16>
    %c0_6 = arith.constant 0 : index
    %c0_7 = arith.constant 0 : index
    %11 = vector.load %arg3[%c0_6, %c0_7] : memref<256x128xbf16, #tpu.memory_space<vmem>>, vector<256x128xbf16>
    %cst_8 = arith.constant dense<0.000000e+00> : vector<16x128xf32>
    %12 = tpu.matmul %10, %11, %cst_8 {dimension_numbers = #tpu.dot_dimension_numbers<[1], [0], [0], [1], [0, 0, 1, 1], [], []>} : vector<16x256xbf16>, vector<256x128xbf16>, vector<16x128xf32> -> vector<16x128xf32>
    %13 = vector.broadcast %9 : vector<1x128xf32> to vector<16x128xf32>
    %14 = arith.addf %12, %13 : vector<16x128xf32>
    %cst_9 = arith.constant 0.000000e+00 : f32
    %15 = vector.broadcast %cst_9 : f32 to vector<16x128xf32>
    %16 = arith.maximumf %14, %15 : vector<16x128xf32>
    %17 = vector.extract_strided_slice %0 {offsets = [2, 0], sizes = [1, 128], strides = [1, 1]} : vector<8x256xf32> to vector<1x128xf32>
    %18 = arith.truncf %16 : vector<16x128xf32> to vector<16x128xbf16>
    %c0_10 = arith.constant 0 : index
    %c0_11 = arith.constant 0 : index
    %19 = vector.load %arg4[%c0_10, %c0_11] : memref<128x128xbf16, #tpu.memory_space<vmem>>, vector<128x128xbf16>
    %cst_12 = arith.constant dense<0.000000e+00> : vector<16x128xf32>
    %20 = tpu.matmul %18, %19, %cst_12 {dimension_numbers = #tpu.dot_dimension_numbers<[1], [0], [0], [1], [0, 0, 1, 1], [], []>} : vector<16x128xbf16>, vector<128x128xbf16>, vector<16x128xf32> -> vector<16x128xf32>
    %21 = vector.broadcast %17 : vector<1x128xf32> to vector<16x128xf32>
    %22 = arith.addf %20, %21 : vector<16x128xf32>
    %cst_13 = arith.constant 0.000000e+00 : f32
    %23 = vector.broadcast %cst_13 : f32 to vector<16x128xf32>
    %24 = arith.maximumf %22, %23 : vector<16x128xf32>
    %25 = vector.extract_strided_slice %0 {offsets = [3, 0], sizes = [1, 256], strides = [1, 1]} : vector<8x256xf32> to vector<1x256xf32>
    %26 = arith.truncf %24 : vector<16x128xf32> to vector<16x128xbf16>
    %c0_14 = arith.constant 0 : index
    %c0_15 = arith.constant 0 : index
    %27 = vector.load %arg5[%c0_14, %c0_15] : memref<128x256xbf16, #tpu.memory_space<vmem>>, vector<128x256xbf16>
    %cst_16 = arith.constant dense<0.000000e+00> : vector<16x256xf32>
    %28 = tpu.matmul %26, %27, %cst_16 {dimension_numbers = #tpu.dot_dimension_numbers<[1], [0], [0], [1], [0, 0, 1, 1], [], []>} : vector<16x128xbf16>, vector<128x256xbf16>, vector<16x256xf32> -> vector<16x256xf32>
    %29 = vector.broadcast %25 : vector<1x256xf32> to vector<16x256xf32>
    %30 = arith.addf %28, %29 : vector<16x256xf32>
    %cst_17 = arith.constant 0.000000e+00 : f32
    %31 = vector.broadcast %cst_17 : f32 to vector<16x256xf32>
    %32 = arith.maximumf %30, %31 : vector<16x256xf32>
    %33 = vector.extract_strided_slice %0 {offsets = [4, 0], sizes = [1, 256], strides = [1, 1]} : vector<8x256xf32> to vector<1x256xf32>
    %34 = arith.truncf %32 : vector<16x256xf32> to vector<16x256xbf16>
    %c0_18 = arith.constant 0 : index
    %c0_19 = arith.constant 0 : index
    %35 = vector.load %arg6[%c0_18, %c0_19] : memref<256x256xbf16, #tpu.memory_space<vmem>>, vector<256x256xbf16>
    %cst_20 = arith.constant dense<0.000000e+00> : vector<16x256xf32>
    %36 = tpu.matmul %34, %35, %cst_20 {dimension_numbers = #tpu.dot_dimension_numbers<[1], [0], [0], [1], [0, 0, 1, 1], [], []>} : vector<16x256xbf16>, vector<256x256xbf16>, vector<16x256xf32> -> vector<16x256xf32>
    %37 = vector.broadcast %33 : vector<1x256xf32> to vector<16x256xf32>
    %38 = arith.addf %36, %37 : vector<16x256xf32>
    %cst_21 = arith.constant 0.000000e+00 : f32
    %39 = vector.broadcast %cst_21 : f32 to vector<16x256xf32>
    %40 = arith.maximumf %38, %39 : vector<16x256xf32>
    %41 = vector.extract_strided_slice %0 {offsets = [5, 0], sizes = [1, 128], strides = [1, 1]} : vector<8x256xf32> to vector<1x128xf32>
    %42 = arith.truncf %40 : vector<16x256xf32> to vector<16x256xbf16>
    %c0_22 = arith.constant 0 : index
    %c0_23 = arith.constant 0 : index
    %43 = vector.load %arg7[%c0_22, %c0_23] : memref<256x128xbf16, #tpu.memory_space<vmem>>, vector<256x128xbf16>
    %cst_24 = arith.constant dense<0.000000e+00> : vector<16x128xf32>
    %44 = tpu.matmul %42, %43, %cst_24 {dimension_numbers = #tpu.dot_dimension_numbers<[1], [0], [0], [1], [0, 0, 1, 1], [], []>} : vector<16x256xbf16>, vector<256x128xbf16>, vector<16x128xf32> -> vector<16x128xf32>
    %45 = vector.broadcast %41 : vector<1x128xf32> to vector<16x128xf32>
    %46 = arith.addf %44, %45 : vector<16x128xf32>
    %c0_25 = arith.constant 0 : index
    %c0_26 = arith.constant 0 : index
    %47 = vector.load %arg9[%c0_25, %c0_26] : memref<16x128xf32, #tpu.memory_space<vmem>>, vector<16x128xf32>
    tpu.vector_store %arg9[%c0_25, %c0_26], %46 {strides = array<i32>} : memref<16x128xf32, #tpu.memory_space<vmem>>, vector<16x128xf32>,
    return
  }
  func.func @transform_0(%arg0: i32) -> (i32, i32) {
    %c0_i32 = arith.constant 0 : i32
    %c0_i32_0 = arith.constant 0 : i32
    return %arg0, %c0_i32 : i32, i32
  }
  func.func @transform_1(%arg0: i32) -> (i32, i32) {
    %c0_i32 = arith.constant 0 : i32
    %c0_i32_0 = arith.constant 0 : i32
    %c0_i32_1 = arith.constant 0 : i32
    return %c0_i32, %c0_i32_0 : i32, i32
  }
  func.func @transform_2(%arg0: i32) -> (i32, i32) {
    %c0_i32 = arith.constant 0 : i32
    %c0_i32_0 = arith.constant 0 : i32
    %c0_i32_1 = arith.constant 0 : i32
    return %c0_i32, %c0_i32_0 : i32, i32
  }
  func.func @transform_3(%arg0: i32) -> (i32, i32) {
    %c0_i32 = arith.constant 0 : i32
    %c0_i32_0 = arith.constant 0 : i32
    %c0_i32_1 = arith.constant 0 : i32
    return %c0_i32, %c0_i32_0 : i32, i32
  }
  func.func @transform_4(%arg0: i32) -> (i32, i32) {
    %c0_i32 = arith.constant 0 : i32
    %c0_i32_0 = arith.constant 0 : i32
    %c0_i32_1 = arith.constant 0 : i32
    return %c0_i32, %c0_i32_0 : i32, i32
  }
  func.func @transform_5(%arg0: i32) -> (i32, i32) {
    %c0_i32 = arith.constant 0 : i32
    %c0_i32_0 = arith.constant 0 : i32
    %c0_i32_1 = arith.constant 0 : i32
    return %c0_i32, %c0_i32_0 : i32, i32
  }
  func.func @transform_6(%arg0: i32) -> (i32, i32) {
    %c0_i32 = arith.constant 0 : i32
    %c0_i32_0 = arith.constant 0 : i32
    %c0_i32_1 = arith.constant 0 : i32
    return %c0_i32, %c0_i32_0 : i32, i32
  }
  func.func @transform_7(%arg0: i32) -> (i32, i32) {
    %c0_i32 = arith.constant 0 : i32
    %c0_i32_0 = arith.constant 0 : i32
    %c0_i32_1 = arith.constant 0 : i32
    return %c0_i32, %c0_i32_0 : i32, i32
  }
  func.func @transform_8(%arg0: i32) -> (i32, i32) {
    %c0_i32 = arith.constant 0 : i32
    %c0_i32_0 = arith.constant 0 : i32
    return %arg0, %c0_i32 : i32, i32
  }
}

</mosaic_0001>

<bundles_post_ra>
// kernel: tpu_custom_call.1
= control target key start
LH: loop header
LB: loop body
LE: loop exit
PB: predicated region body
PF: predicated region fallthrough
CT: control target
= control target key end

     0   :  { %13 = vsyncpa [#allocation3], 0  ;;  %s1747_s0 = inlined_call_operand.hbm [shape: bf16[16,32], index: 0, kind: input, shape index: {}]   ;;  %s1748_s1 = inlined_call_operand.hbm [shape: bf16[32,256], index: 1, kind: input, shape index: {}]   ;;  %s1749_s2 = inlined_call_operand.hbm [shape: bf16[256,128], index: 2, kind: input, shape index: {}]   ;;  %s1750_s3 = inlined_call_operand.hbm [shape: bf16[128,128], index: 3, kind: input, shape index: {}]   ;;  %s1751_s4 = inlined_call_operand.hbm [shape: bf16[128,256], index: 4, kind: input, shape index: {}]   ;;  %s1752_s5 = inlined_call_operand.hbm [shape: bf16[256,256], index: 5, kind: input, shape index: {}]   ;;  %s1753_s6 = inlined_call_operand.hbm [shape: bf16[256,128], index: 6, kind: input, shape index: {}]   ;;  %s1754_s7 = inlined_call_operand.hbm [shape: f32[8,256], index: 7, kind: input, shape index: {}]   ;;  %s1755_s8 = inlined_call_operand.hbm [shape: f32[16,128], index: 8, kind: output, shape index: {}]  }
   0x1   :  { %14 = vsyncpa [#allocation6], 0 }
   0x2   :  { %15 = vsyncpa [#allocation9], 0 }
   0x3   :  { %16 = vsyncpa [#allocation12], 0 }
   0x4   :  { %17 = vsyncpa [#allocation15], 0 }
   0x5   :  { %18 = vsyncpa [#allocation4], 0  ;;  %s1612_s27 = smov [#allocation5]  }
   0x6   :  { %s36_s28 = sshll.u32 %s1612_s27, 4  ;;  %s37_s28 = int_to_ptr.vmem [resolvable:$true] %s36_s28 }
   0x7   :  { %s1428_s29 = scalar_lea.vmem %s37_s28, 512  ;;  %p1433_p1 = scmp.lt.s32.totalorder %s37_s28, %s37_s28 }
   0x8   :  { %p1429_p0 = scmp.ne.s32.totalorder %s37_s28, %s1428_s29  ;;  %p1434_p2 = scmp.lt.s32.totalorder %s1428_s29, %s1428_s29 }
   0xa   :  { %p1435_p3 = por %p1434_p2, %p1433_p1 }
   0xc   :  { %p1436_p4 = pnand %p1435_p3, %p1429_p0 }
   0xe   :  { %1439 = shalt.err (!%p1436_p4)
}
   0xf   :  { %s1613_s30 = smov 128   ;;  %s1614_s9 = smov 8  }
  0x10   :  { %42 = dma.hbm_to_vmem [thread:$0]  %s1748_s1, 512, %s37_s28, [#allocation6], %s1613_s30, %s1613_s30, %s1614_s9  }
  0x11   :  { %s1615_s12 = smov [#allocation8]   ;;  %s1616_s14 = smov [#allocation11]  }
  0x12   :  { %s60_s13 = sshll.u32 %s1615_s12, 4  ;;  %s84_s15 = sshll.u32 %s1616_s14, 4  ;;  %s61_s13 = int_to_ptr.vmem [resolvable:$true] %s60_s13  ;;  %s85_s15 = int_to_ptr.vmem [resolvable:$true] %s84_s15 }
  0x13   :  { %s1448_s16 = scalar_lea.vmem %s61_s13, 1024  ;;  %p1453_p6 = scmp.lt.s32.totalorder %s61_s13, %s61_s13 }
  0x14   :  { %p1449_p5 = scmp.ne.s32.totalorder %s61_s13, %s1448_s16  ;;  %p1454_p7 = scmp.lt.s32.totalorder %s1448_s16, %s1448_s16 }
  0x16   :  { %p1455_p8 = por %p1454_p7, %p1453_p6 }
  0x18   :  { %p1456_p9 = pnand %p1455_p8, %p1449_p5 }
  0x1a   :  { %1459 = shalt.err (!%p1456_p9)
}
  0x1b   :  { %s1617_s17 = smov 64   ;;  %s1618_s18 = smov 4  }
  0x1c   :  { %66 = dma.hbm_to_vmem [thread:$0]  %s1750_s3, 1024, %s61_s13, [#allocation9], %s1617_s17, %s1617_s17, %s1618_s18  }
  0x1d   :  { %s1468_s1 = scalar_lea.vmem %s85_s15, 4096  ;;  %p1473_p11 = scmp.lt.s32.totalorder %s85_s15, %s85_s15 }
  0x1e   :  { %p1469_p10 = scmp.ne.s32.totalorder %s85_s15, %s1468_s1  ;;  %p1474_p12 = scmp.lt.s32.totalorder %s1468_s1, %s1468_s1 }
  0x20   :  { %p1475_p13 = por %p1474_p12, %p1473_p11 }
  0x22   :  { %p1476_p0 = pnand %p1475_p13, %p1469_p10 }
  0x24   :  { %1479 = shalt.err (!%p1476_p0)
}
  0x25   :  { %90 = dma.hbm_to_vmem [thread:$0]  %s1752_s5, 4096, %s85_s15, [#allocation12], %s1613_s30, %s1613_s30, %s1614_s9  }
  0x26   :  { %s1619_s23 = smov [#allocation2]   ;;  %s1620_s25 = smov [#allocation7]  }
  0x27   :  { %s24_s24 = sshll.u32 %s1619_s23, 4  ;;  %s48_s3 = sshll.u32 %s1620_s25, 4  ;;  %s25_s24 = int_to_ptr.vmem [resolvable:$true] %s24_s24  ;;  %s49_s3 = int_to_ptr.vmem [resolvable:$true] %s48_s3 }
  0x28   :  { %s1488_s26 = scalar_lea.vmem %s25_s24, 128  ;;  %p1493_p2 = scmp.lt.s32.totalorder %s25_s24, %s25_s24 }
  0x29   :  { %p1489_p1 = scmp.ne.s32.totalorder %s25_s24, %s1488_s26  ;;  %p1494_p3 = scmp.lt.s32.totalorder %s1488_s26, %s1488_s26 }
  0x2b   :  { %p1495_p4 = por %p1494_p3, %p1493_p2 }
  0x2d   :  { %p1496_p5 = pnand %p1495_p4, %p1489_p1 }
  0x2f   :  { %1499 = shalt.err (!%p1496_p5)
}
  0x30   :  { %30 = dma.hbm_to_vmem [thread:$0]  %s1747_s0, 128, %s25_s24, [#allocation3], %s1617_s17, %s1617_s17, %s1618_s18  }
  0x31   :  { %s1508_s5 = scalar_lea.vmem %s49_s3, 2048  ;;  %p1513_p7 = scmp.lt.s32.totalorder %s49_s3, %s49_s3 }
  0x32   :  { %p1509_p6 = scmp.ne.s32.totalorder %s49_s3, %s1508_s5  ;;  %p1514_p8 = scmp.lt.s32.totalorder %s1508_s5, %s1508_s5 }
  0x34   :  { %p1515_p9 = por %p1514_p8, %p1513_p7 }
  0x36   :  { %p1516_p10 = pnand %p1515_p9, %p1509_p6 }
  0x38   :  { %1519 = shalt.err (!%p1516_p10)
}
  0x39   :  { %54 = dma.hbm_to_vmem [thread:$0]  %s1749_s2, 2048, %s49_s3, [#allocation6], %s1617_s17, %s1617_s17, %s1618_s18  }
  0x3a   :  { %s1621_s11 = smov [#allocation10]   ;;  %s1622_s13 = smov [#allocation13]  }
  0x3b   :  { %s72_s12 = sshll.u32 %s1621_s11, 4  ;;  %s96_s0 = sshll.u32 %s1622_s13, 4  ;;  %s73_s12 = int_to_ptr.vmem [resolvable:$true] %s72_s12  ;;  %s97_s0 = int_to_ptr.vmem [resolvable:$true] %s96_s0 }
  0x3c   :  { %s1528_s14 = scalar_lea.vmem %s73_s12, 2048  ;;  %p1533_p12 = scmp.lt.s32.totalorder %s73_s12, %s73_s12 }
  0x3d   :  { %p1529_p11 = scmp.ne.s32.totalorder %s73_s12, %s1528_s14  ;;  %p1534_p13 = scmp.lt.s32.totalorder %s1528_s14, %s1528_s14 }
  0x3f   :  { %p1535_p0 = por %p1534_p13, %p1533_p12 }
  0x41   :  { %p1536_p1 = pnand %p1535_p0, %p1529_p11 }
  0x43   :  { %1539 = shalt.err (!%p1536_p1)
}
  0x44   :  { %78 = dma.hbm_to_vmem [thread:$0]  %s1751_s4, 2048, %s73_s12, [#allocation9], %s1613_s30, %s1613_s30, %s1614_s9  }
  0x45   :  { %s1548_s2 = scalar_lea.vmem %s97_s0, 2048  ;;  %p1553_p3 = scmp.lt.s32.totalorder %s97_s0, %s97_s0 }
  0x46   :  { %p1549_p2 = scmp.ne.s32.totalorder %s97_s0, %s1548_s2  ;;  %p1554_p4 = scmp.lt.s32.totalorder %s1548_s2, %s1548_s2 }
  0x48   :  { %p1555_p5 = por %p1554_p4, %p1553_p3 }
  0x4a   :  { %p1556_p6 = pnand %p1555_p5, %p1549_p2 }
  0x4c   :  { %1559 = shalt.err (!%p1556_p6)
}
  0x4d   :  { %102 = dma.hbm_to_vmem [thread:$0]  %s1753_s6, 2048, %s97_s0, [#allocation12], %s1617_s17, %s1617_s17, %s1618_s18  }
  0x4e   :  { %s1623_s1 = smov [#allocation14]  }
  0x4f   :  { %s109_s21 = sshll.u32 %s1623_s1, 4  ;;  %s110_s21 = int_to_ptr.vmem [resolvable:$true] %s109_s21 }
  0x50   :  { %s1568_s22 = scalar_lea.vmem %s110_s21, 256  ;;  %p1573_p8 = scmp.lt.s32.totalorder %s110_s21, %s110_s21 }
  0x51   :  { %p1569_p7 = scmp.ne.s32.totalorder %s110_s21, %s1568_s22  ;;  %p1574_p9 = scmp.lt.s32.totalorder %s1568_s22, %s1568_s22 }
  0x53   :  { %p1575_p10 = por %p1574_p9, %p1573_p8 }
  0x55   :  { %p1576_p11 = pnand %p1575_p10, %p1569_p7 }
  0x57   :  { %1579 = shalt.err (!%p1576_p11)
}
  0x58   :  { %112 = dma.hbm_to_vmem [thread:$0]  %s1754_s7, 256, %s110_s21, [#allocation15]  }
  0x59   :  { %1600 = dma.done.wait [#allocation3], 128  }
  0x5a   :  { %1601 = vsyncadd [#allocation3], 4294967168 }
  0x5b   :  { %1602 = dma.done.wait [#allocation6], 2560  }
  0x5c   :  { %1603 = vsyncadd [#allocation6], 4294964736 }
  0x5d   :  { %1604 = dma.done.wait [#allocation9], 3072  }
  0x5e   :  { %1605 = vsyncadd [#allocation9], 4294964224 }
  0x5f   :  { %1606 = dma.done.wait [#allocation12], 6144  }
  0x60   :  { %1607 = vsyncadd [#allocation12], 4294961152 }
  0x61   :  { %1608 = dma.done.wait [#allocation15], 256  }
  0x62   :  { %1609 = vsyncadd [#allocation15], 4294967040  ;;  %v1624_v0 = vmov 0   ;;  %v1301_v1 = vld [vmem:[#allocation5 + $0x14] ss:$8 sps:$4 sm:$0xff]   ;;  %vm179_vm0 = vcmask 261120   ;;  %v146_v27 = vlaneseq }
  0x63   :  { %215 = vmatprep.mubr.bf16.mxu0 %v1624_v0  ;;  %v1303_v2 = vld [vmem:[#allocation5 + $0x10] ss:$8 sps:$4 sm:$0xff]   ;;  %195 = vmatprep.subr.bf16.mxu0 %v1301_v1  ;;  %v1304_v3 = vld [vmem:[#allocation5 + $0x4] ss:$8 sps:$4 sm:$0xff]   ;;  %v1306_v4 = vld [vmem:[#allocation5] ss:$8 sps:$4 sm:$0xff]  }
  0x64   :  { %196 = vmatpush1.bf16.msra.mxu0 %v1303_v2  ;;  %v1307_v5 = vld [vmem:[#allocation2] sm:$0xff]   ;;  %v1310_v8 = vld [vmem:[#allocation7 + $0x70] sm:$0xff]   ;;  %v1312_v10 = vld [vmem:[#allocation7 + $0x68] sm:$0xff]   ;;  %v1625_v23 = vmov 0.0   ;;  %v1719_v28 = vshrl.u32 %v146_v27, 7  ;;  %vm1626_vm1 = vmmov 0  }
  0x65   :  { %197 = vmatprep.subr.bf16.mxu0 %v1304_v3  ;;  %v1308_v6 = vld [vmem:[#allocation7 + $0x78] sm:$0xff]   ;;  %v1311_v9 = vld [vmem:[#allocation7 + $0x30] sm:$0xff]   ;;  %v1313_v11 = vld [vmem:[#allocation7 + $0x28] sm:$0xff]   ;;  %s1627_s6 = smov [#allocation16]  }
  0x66   :  { %v1309_v7 = vld [vmem:[#allocation7 + $0x38] sm:$0xff]   ;;  %1212 = vmatprep.subr.bf16.mxu1 %v1308_v6  ;;  %v1314_v12 = vld [vmem:[#allocation7 + $0x60] sm:$0xff]   ;;  %v1318_v16 = vld [vmem:[#allocation7 + $0x50] sm:$0xff]   ;;  %v148_v29 = vsub.s32 0, %v1719_v28  ;;  %s1102_s7 = sshll.u32 %s1627_s6, 4  ;;  %s1103_s7 = int_to_ptr.vmem [resolvable:$true] %s1102_s7 }
  0x67   :  { %1213 = vmatpush3.bf16.msra.mxu1 %v1309_v7  ;;  %v1315_v13 = vld [vmem:[#allocation7 + $0x20] sm:$0xff]   ;;  %v1316_v14 = vld [vmem:[#allocation7 + $0x58] sm:$0xff]   ;;  %v1319_v17 = vld [vmem:[#allocation7 + $0x10] sm:$0xff]   ;;  %s1580_s17 = scalar_lea.vmem %s1103_s7, 256  ;;  %p1585_p13 = scmp.lt.s32.totalorder %s1103_s7, %s1103_s7 }
  0x68   :  { %198 = vmatpush1.bf16.msra.mxu0 %v1306_v4  ;;  %1214 = vmatprep.subr.bf16.mxu1 %v1310_v8  ;;  %v1317_v15 = vld [vmem:[#allocation7 + $0x18] sm:$0xff]   ;;  %v1320_v18 = vld [vmem:[#allocation7 + $0x48] sm:$0xff]   ;;  %v1322_v20 = vld [vmem:[#allocation7 + $0x40] sm:$0xff]   ;;  %p1581_p12 = scmp.ne.s32.totalorder %s1103_s7, %s1580_s17  ;;  %p1586_p0 = scmp.lt.s32.totalorder %s1580_s17, %s1580_s17 }
  0x69   :  { %v1321_v19 = vld [vmem:[#allocation7 + $0x8] sm:$0xff]   ;;  %v1323_v21 = vld [vmem:[#allocation7] sm:$0xff]   ;;  %v1324_v22 = vld [vmem:[#allocation8 + $0x38] sm:$0xff]   ;;  %1265 = vmatprep.subr.bf16.mxu0 %v1625_v23 }
  0x6a   :  { %v1325_v24 = vld [vmem:[#allocation8 + $0x30] sm:$0xff]   ;;  %v1326_v25 = vld [vmem:[#allocation8 + $0x28] sm:$0xff]   ;;  %v1327_v26 = vld [vmem:[#allocation8 + $0x20] sm:$0xff]   ;;  %p1587_p1 = por %p1586_p0, %p1585_p13 }
  0x6b   :  { %1123 = vmatmul.mubr.msk.bf16.vlgmr.msra.gmra.mxu0 %vm179_vm0, %v1307_v5  ;;  %1215 = vmatpush3.bf16.msra.mxu1 %v1311_v9  ;;  %v1722_v30 = vld [vmem:[#allocation14 + $0x8] sm:$0xff]  ;;  %v1724_v31 = vld [vmem:[#allocation14] sm:$0xff]  ;;  %v1328_v48 = vld [vmem:[#allocation8 + $0x18] sm:$0xff]  }
  0x6c   :  { %1216 = vmatprep.subr.bf16.mxu1 %v1312_v10  ;;  %1266 = vmatpush3.bf16.msra.mxu0 %v1324_v22  ;;  %v153_v33 = vrot.slane %v1722_v30, %v148_v29  ;;  %v149_v34 = vrot.slane %v1724_v31, %v148_v29  ;;  %v1329_v49 = vld [vmem:[#allocation8 + $0x10] sm:$0xff]   ;;  %v1330_v50 = vld [vmem:[#allocation8 + $0x8] sm:$0xff]   ;;  %v1331_v51 = vld [vmem:[#allocation8] sm:$0xff]   ;;  %p1588_p2 = pnand %p1587_p1, %p1581_p12 }
  0x6d   :  { %1267 = vmatprep.subr.bf16.mxu0 %v1625_v23  ;;  %1281 = vmatprep.mubr.msk.bf16.mxu0 %vm1626_vm1, %v1625_v23  ;;  %v1332_v52 = vld [vmem:[#allocation10 + $0x70] ss:$8 sps:$4 sm:$0xff]   ;;  %v1334_v53 = vld [vmem:[#allocation10 + $0x74] ss:$8 sps:$4 sm:$0xff]   ;;  %v1337_v54 = vld [vmem:[#allocation10 + $0x64] ss:$8 sps:$4 sm:$0xff]  }
  0x6e   :  { %v1335_v55 = vld [vmem:[#allocation10 + $0x60] ss:$8 sps:$4 sm:$0xff]   ;;  %v1340_v56 = vld [vmem:[#allocation10 + $0x54] ss:$8 sps:$4 sm:$0xff]   ;;  %v1338_v57 = vld [vmem:[#allocation10 + $0x50] ss:$8 sps:$4 sm:$0xff]  }
  0x6f   :  { %1217 = vmatpush3.bf16.msra.mxu1 %v1313_v11  ;;  %v1343_v58 = vld [vmem:[#allocation10 + $0x44] ss:$8 sps:$4 sm:$0xff]   ;;  %v1341_v59 = vld [vmem:[#allocation10 + $0x40] ss:$8 sps:$4 sm:$0xff]   ;;  %v1346_v60 = vld [vmem:[#allocation10 + $0x34] ss:$8 sps:$4 sm:$0xff]  }
  0x70   :  { %1218 = vmatprep.subr.bf16.mxu1 %v1314_v12  ;;  %1268 = vmatpush3.bf16.msra.mxu0 %v1325_v24  ;;  %v1344_v61 = vld [vmem:[#allocation10 + $0x30] ss:$8 sps:$4 sm:$0xff]   ;;  %v1349_v62 = vld [vmem:[#allocation10 + $0x24] ss:$8 sps:$4 sm:$0xff]   ;;  %v1347_v63 = vld [vmem:[#allocation10 + $0x20] ss:$8 sps:$4 sm:$0xff]  }
  0x71   :  { %1269 = vmatprep.subr.bf16.mxu0 %v1625_v23  ;;  %v1362_v22 = vld [vmem:[#allocation11 + $0x50] ss:$8 sps:$4 sm:$0xff]   ;;  %v1365_v24 = vld [vmem:[#allocation11 + $0x40] ss:$8 sps:$4 sm:$0xff]   ;;  %v1373_v27 = vld [vmem:[#allocation11 + $0x24] ss:$8 sps:$4 sm:$0xff]  }
  0x72   :  { %v1371_v29 = vld [vmem:[#allocation11 + $0x20] ss:$8 sps:$4 sm:$0xff]  }
  0x73   :  { %1219 = vmatpush3.bf16.msra.mxu1 %v1315_v13  ;;  %v1352_v13 = vld [vmem:[#allocation10 + $0x14] ss:$8 sps:$4 sm:$0xff]  }
  0x74   :  { %1220 = vmatprep.subr.bf16.mxu1 %v1316_v14  ;;  %1270 = vmatpush3.bf16.msra.mxu0 %v1326_v25  ;;  %v1350_v14 = vld [vmem:[#allocation10 + $0x10] ss:$8 sps:$4 sm:$0xff]   ;;  %v1370_v25 = vld [vmem:[#allocation11 + $0x34] ss:$8 sps:$4 sm:$0xff]  }
  0x75   :  { %1271 = vmatprep.subr.bf16.mxu0 %v1625_v23 }
  0x77   :  { %1221 = vmatpush3.bf16.msra.mxu1 %v1317_v15  ;;  %v1355_v15 = vld [vmem:[#allocation10 + $0x4] ss:$8 sps:$4 sm:$0xff]  }
  0x78   :  { %1222 = vmatprep.subr.bf16.mxu1 %v1318_v16  ;;  %1272 = vmatpush3.bf16.msra.mxu0 %v1327_v26  ;;  %v1353_v16 = vld [vmem:[#allocation10] ss:$8 sps:$4 sm:$0xff]   ;;  %v1368_v26 = vld [vmem:[#allocation11 + $0x30] ss:$8 sps:$4 sm:$0xff]  }
  0x79   :  { %1273 = vmatprep.subr.bf16.mxu0 %v1625_v23 }
  0x7b   :  { %1223 = vmatpush3.bf16.msra.mxu1 %v1319_v17  ;;  %v1356_v17 = vld [vmem:[#allocation11 + $0x70] ss:$8 sps:$4 sm:$0xff]  }
  0x7c   :  { %1224 = vmatprep.subr.bf16.mxu1 %v1320_v18  ;;  %1274 = vmatpush3.bf16.msra.mxu0 %v1328_v48  ;;  %v1358_v18 = vld [vmem:[#allocation11 + $0x74] ss:$8 sps:$4 sm:$0xff]  }
  0x7d   :  { %1275 = vmatprep.subr.bf16.mxu0 %v1625_v23 }
  0x7f   :  { %1225 = vmatpush3.bf16.msra.mxu1 %v1321_v19  ;;  %v1361_v19 = vld [vmem:[#allocation11 + $0x64] ss:$8 sps:$4 sm:$0xff]  }
  0x80   :  { %1226 = vmatprep.subr.bf16.mxu1 %v1322_v20  ;;  %1276 = vmatpush3.bf16.msra.mxu0 %v1329_v49  ;;  %v1359_v20 = vld [vmem:[#allocation11 + $0x60] ss:$8 sps:$4 sm:$0xff]  }
  0x81   :  { %1277 = vmatprep.subr.bf16.mxu0 %v1625_v23 }
  0x83   :  { %1227 = vmatpush3.bf16.msra.mxu1 %v1323_v21  ;;  %v1364_v21 = vld [vmem:[#allocation11 + $0x54] ss:$8 sps:$4 sm:$0xff]  }
  0x84   :  { %1278 = vmatpush3.bf16.msra.mxu0 %v1330_v50  ;;  %624 = vmatprep.subr.bf16.mxu1 %v1334_v53 }
  0x85   :  { %1279 = vmatprep.subr.bf16.mxu0 %v1625_v23  ;;  %v1367_v23 = vld [vmem:[#allocation11 + $0x44] ss:$8 sps:$4 sm:$0xff]  }
  0x88   :  { %1280 = vmatpush3.bf16.msra.mxu0 %v1331_v51 }
  0x89   :  { %873 = vmatprep.subr.bf16.mxu0 %v1358_v18 }
 0x12b   :  { %v217_v32 = vpop.f32.mrf.mxu0 }
 0x12c   :  { %v218_v39 = vadd.f32 %v217_v32, %v149_v34  ;;  %v1376_v32 = vld [vmem:[#allocation11 + $0x14] ss:$8 sps:$4 sm:$0xff]  }
 0x12d   :  { %v219_v35 = vpop.f32.mrf.mxu0 }
 0x12e   :  { %v220_v37 = vadd.f32 %v219_v35, %v153_v33  ;;  %v226_v45 = vmax.f32 %v218_v39, 0.0  ;;  %v1377_v35 = vld [vmem:[#allocation11] ss:$8 sps:$4 sm:$0xff]  }
 0x12f   :  { %v221_v36 = vpop.f32.mrf.mxu0  ;;  %v1383_v39 = vld [vmem:[#allocation11 + $0xe0] ss:$8 sps:$4 sm:$0xff]  }
 0x130   :  { %v222_v38 = vadd.f32 %v221_v36, %v149_v34  ;;  %v227_v43 = vmax.f32 %v220_v37, 0.0  ;;  %v1379_v34 = vld [vmem:[#allocation11 + $0x4] ss:$8 sps:$4 sm:$0xff]   ;;  %v1382_v36 = vld [vmem:[#allocation11 + $0xf4] ss:$8 sps:$4 sm:$0xff]  }
 0x131   :  { %v223_v40 = vpop.f32.mrf.mxu0  ;;  %v1380_v37 = vld [vmem:[#allocation11 + $0xf0] ss:$8 sps:$4 sm:$0xff]  }
 0x132   :  { %v224_v41 = vadd.f32 %v223_v40, %v153_v33  ;;  %v228_v42 = vmax.f32 %v222_v38, 0.0  ;;  %v1374_v33 = vld [vmem:[#allocation11 + $0x10] ss:$8 sps:$4 sm:$0xff]   ;;  %v1385_v38 = vld [vmem:[#allocation11 + $0xe4] ss:$8 sps:$4 sm:$0xff]  }
 0x133   :  { %v1388_v40 = vld [vmem:[#allocation11 + $0xd4] ss:$8 sps:$4 sm:$0xff]  }
 0x134   :  { %v229_v44 = vmax.f32 %v224_v41, 0.0  ;;  %v230_v47 = vpack.c.bf16 %v228_v42, %v226_v45  ;;  %v1386_v41 = vld [vmem:[#allocation11 + $0xd0] ss:$8 sps:$4 sm:$0xff]   ;;  %v1391_v42 = vld [vmem:[#allocation11 + $0xc4] ss:$8 sps:$4 sm:$0xff]  }
 0x135   :  { %v1392_v45 = vld [vmem:[#allocation11 + $0xb0] ss:$8 sps:$4 sm:$0xff]  }
 0x136   :  { %v231_v46 = vpack.c.bf16 %v229_v44, %v227_v43  ;;  %v1389_v43 = vld [vmem:[#allocation11 + $0xc0] ss:$8 sps:$4 sm:$0xff]   ;;  %v1394_v44 = vld [vmem:[#allocation11 + $0xb4] ss:$8 sps:$4 sm:$0xff]  }
 0x138   :  { %396 = vmatprep.mubr.bf16.mxu1 %v231_v46  ;;  %v426_v46 = vsub.s32 2, %v1719_v28 }
 0x139   :  { %397 = vmatmul.mubr.bf16.vlgmr.msra.gmra.mxu1 %v230_v47 }
 0x13a   :  { %656 = vmatprep.mubr.bf16.mxu1 %v1624_v0  ;;  %625 = vmatpush1.bf16.msra.mxu1 %v1332_v52  ;;  %v266_v0 = vsub.s32 1, %v1719_v28  ;;  %v427_v47 = vrot.slane %v1724_v31, %v426_v46 }
 0x13b   :  { %626 = vmatprep.subr.bf16.mxu1 %v1337_v54 }
 0x13c   :  { %v267_v3 = vrot.slane %v1724_v31, %v266_v0  ;;  %v1405_v0 = vld [vmem:[#allocation13 + $0x38] sm:$0xff]  }
 0x13e   :  { %627 = vmatpush1.bf16.msra.mxu1 %v1335_v55 }
 0x13f   :  { %628 = vmatprep.subr.bf16.mxu1 %v1340_v56 }
 0x142   :  { %629 = vmatpush1.bf16.msra.mxu1 %v1338_v57  ;;  %v1397_v57 = vld [vmem:[#allocation11 + $0xa4] ss:$8 sps:$4 sm:$0xff]  }
 0x143   :  { %630 = vmatprep.subr.bf16.mxu1 %v1343_v58  ;;  %v1395_v58 = vld [vmem:[#allocation11 + $0xa0] ss:$8 sps:$4 sm:$0xff]  }
 0x146   :  { %631 = vmatpush1.bf16.msra.mxu1 %v1341_v59  ;;  %v1400_v59 = vld [vmem:[#allocation11 + $0x94] ss:$8 sps:$4 sm:$0xff]  }
 0x147   :  { %632 = vmatprep.subr.bf16.mxu1 %v1346_v60  ;;  %v1398_v60 = vld [vmem:[#allocation11 + $0x90] ss:$8 sps:$4 sm:$0xff]  }
 0x14a   :  { %633 = vmatpush1.bf16.msra.mxu1 %v1344_v61  ;;  %v1403_v61 = vld [vmem:[#allocation11 + $0x84] ss:$8 sps:$4 sm:$0xff]  }
 0x14b   :  { %634 = vmatprep.subr.bf16.mxu1 %v1349_v62  ;;  %v1401_v62 = vld [vmem:[#allocation11 + $0x80] ss:$8 sps:$4 sm:$0xff]  }
 0x14e   :  { %635 = vmatpush1.bf16.msra.mxu1 %v1347_v63  ;;  %v1404_v63 = vld [vmem:[#allocation13 + $0x78] sm:$0xff]  }
 0x14f   :  { %636 = vmatprep.subr.bf16.mxu1 %v1352_v13 }
 0x152   :  { %637 = vmatpush1.bf16.msra.mxu1 %v1350_v14 }
 0x153   :  { %638 = vmatprep.subr.bf16.mxu1 %v1355_v15 }
 0x156   :  { %639 = vmatpush1.bf16.msra.mxu1 %v1353_v16 }
 0x157   :  { %1243 = vmatprep.subr.bf16.mxu1 %v1404_v63 }
 0x1f9   :  { %v1228_v1 = vpop.f32.mrf.mxu1 }
 0x1fb   :  { %v1229_v2 = vpop.f32.mrf.mxu1 }
 0x1fc   :  { %v1230_v4 = vadd.f32 %v1229_v2, %v1228_v1  ;;  %v1406_v1 = vld [vmem:[#allocation13 + $0x70] sm:$0xff]  }
 0x1fd   :  { %v1231_v5 = vpop.f32.mrf.mxu1  ;;  %v1407_v2 = vld [vmem:[#allocation13 + $0x30] sm:$0xff]  }
 0x1fe   :  { %v399_v7 = vadd.f32 %v1230_v4, %v267_v3  ;;  %v1409_v4 = vld [vmem:[#allocation13 + $0x28] sm:$0xff]  }
 0x1ff   :  { %v1232_v6 = vpop.f32.mrf.mxu1 }
 0x200   :  { %v1233_v8 = vadd.f32 %v1232_v6, %v1231_v5  ;;  %v405_v10 = vmax.f32 %v399_v7, 0.0  ;;  %v1410_v5 = vld [vmem:[#allocation13 + $0x60] sm:$0xff]   ;;  %v1412_v7 = vld [vmem:[#allocation13 + $0x58] sm:$0xff]  }
 0x201   :  { %v1411_v6 = vld [vmem:[#allocation13 + $0x20] sm:$0xff]  }
 0x202   :  { %v402_v9 = vadd.f32 %v1233_v8, %v267_v3  ;;  %v1408_v3 = vld [vmem:[#allocation13 + $0x68] sm:$0xff]   ;;  %v1413_v8 = vld [vmem:[#allocation13 + $0x18] sm:$0xff]  }
 0x204   :  { %v406_v11 = vmax.f32 %v402_v9, 0.0  ;;  %v538_v9 = vsub.s32 3, %v1719_v28 }
 0x206   :  { %v407_v12 = vpack.c.bf16 %v406_v11, %v405_v10  ;;  %v543_v11 = vrot.slane %v1722_v30, %v538_v9 }
 0x208   :  { %1282 = vmatmul.mubr.bf16.vlgmr.msra.gmra.mxu0 %v407_v12  ;;  %v539_v12 = vrot.slane %v1724_v31, %v538_v9 }
 0x209   :  { %874 = vmatpush1.bf16.msra.mxu0 %v1356_v17 }
 0x20a   :  { %875 = vmatprep.subr.bf16.mxu0 %v1361_v19 }
 0x20d   :  { %876 = vmatpush1.bf16.msra.mxu0 %v1359_v20 }
 0x20e   :  { %877 = vmatprep.subr.bf16.mxu0 %v1364_v21 }
 0x211   :  { %878 = vmatpush1.bf16.msra.mxu0 %v1362_v22 }
 0x212   :  { %879 = vmatprep.subr.bf16.mxu0 %v1367_v23 }
 0x215   :  { %880 = vmatpush1.bf16.msra.mxu0 %v1365_v24 }
 0x216   :  { %881 = vmatprep.subr.bf16.mxu0 %v1370_v25 }
 0x219   :  { %882 = vmatpush1.bf16.msra.mxu0 %v1368_v26  ;;  %v1414_v26 = vld [vmem:[#allocation13 + $0x50] sm:$0xff]  }
 0x21a   :  { %883 = vmatprep.subr.bf16.mxu0 %v1373_v27  ;;  %v1415_v27 = vld [vmem:[#allocation13 + $0x10] sm:$0xff]  }
 0x21d   :  { %884 = vmatpush1.bf16.msra.mxu0 %v1371_v29  ;;  %v1416_v29 = vld [vmem:[#allocation13 + $0x48] sm:$0xff]  }
 0x21e   :  { %885 = vmatprep.subr.bf16.mxu0 %v1376_v32  ;;  %v1417_v32 = vld [vmem:[#allocation13 + $0x8] sm:$0xff]  }
 0x221   :  { %886 = vmatpush1.bf16.msra.mxu0 %v1374_v33  ;;  %v1418_v33 = vld [vmem:[#allocation13 + $0x40] sm:$0xff]  }
 0x222   :  { %887 = vmatprep.subr.bf16.mxu0 %v1379_v34  ;;  %v1419_v34 = vld [vmem:[#allocation13] sm:$0xff]  }
 0x225   :  { %888 = vmatpush1.bf16.msra.mxu0 %v1377_v35  ;;  %v707_v35 = vsub.s32 4, %v1719_v28 }
 0x226   :  { %889 = vmatprep.subr.bf16.mxu0 %v1382_v36 }
 0x229   :  { %890 = vmatpush2.bf16.msra.mxu0 %v1380_v37  ;;  %v712_v37 = vrot.slane %v1722_v30, %v707_v35 }
 0x22a   :  { %891 = vmatprep.subr.bf16.mxu0 %v1385_v38  ;;  %v708_v38 = vrot.slane %v1724_v31, %v707_v35 }
 0x22d   :  { %892 = vmatpush2.bf16.msra.mxu0 %v1383_v39 }
 0x22e   :  { %893 = vmatprep.subr.bf16.mxu0 %v1388_v40 }
 0x231   :  { %894 = vmatpush2.bf16.msra.mxu0 %v1386_v41 }
 0x232   :  { %895 = vmatprep.subr.bf16.mxu0 %v1391_v42 }
 0x235   :  { %896 = vmatpush2.bf16.msra.mxu0 %v1389_v43 }
 0x236   :  { %897 = vmatprep.subr.bf16.mxu0 %v1394_v44 }
 0x239   :  { %898 = vmatpush2.bf16.msra.mxu0 %v1392_v45 }
 0x23a   :  { %899 = vmatprep.subr.bf16.mxu0 %v1397_v57 }
 0x23d   :  { %900 = vmatpush2.bf16.msra.mxu0 %v1395_v58 }
 0x23e   :  { %901 = vmatprep.subr.bf16.mxu0 %v1400_v59 }
 0x241   :  { %902 = vmatpush2.bf16.msra.mxu0 %v1398_v60 }
 0x242   :  { %903 = vmatprep.subr.bf16.mxu0 %v1403_v61 }
 0x245   :  { %904 = vmatpush2.bf16.msra.mxu0 %v1401_v62 }
 0x2c8   :  { %v510_v48 = vpop.f32.mrf.mxu0 }
 0x2c9   :  { %v511_v50 = vadd.f32 %v510_v48, %v427_v47 }
 0x2ca   :  { %v1283_v49 = vpop.f32.mrf.mxu0 }
 0x2cb   :  { %v517_v54 = vmax.f32 %v511_v50, 0.0 }
 0x2cc   :  { %v513_v51 = vpop.f32.mrf.mxu0 }
 0x2cd   :  { %v514_v52 = vadd.f32 %v513_v51, %v427_v47 }
 0x2ce   :  { %v1284_v53 = vpop.f32.mrf.mxu0 }
 0x2cf   :  { %v518_v55 = vmax.f32 %v514_v52, 0.0  ;;  %v956_v52 = vsub.s32 5, %v1719_v28 }
 0x2d1   :  { %v519_v56 = vpack.c.bf16 %v518_v55, %v517_v54  ;;  %v957_v53 = vrot.slane %v1724_v31, %v956_v52 }
 0x2d3   :  { %657 = vmatmul.mubr.bf16.vlgmr.msra.gmra.mxu1 %v519_v56 }
 0x2d4   :  { %1244 = vmatpush3.bf16.msra.mxu1 %v1405_v0 }
 0x2d5   :  { %1245 = vmatprep.subr.bf16.mxu1 %v1406_v1 }
 0x2d8   :  { %1246 = vmatpush3.bf16.msra.mxu1 %v1407_v2 }
 0x2d9   :  { %1247 = vmatprep.subr.bf16.mxu1 %v1408_v3 }
 0x2dc   :  { %1248 = vmatpush3.bf16.msra.mxu1 %v1409_v4 }
 0x2dd   :  { %1249 = vmatprep.subr.bf16.mxu1 %v1410_v5 }
 0x2e0   :  { %1250 = vmatpush3.bf16.msra.mxu1 %v1411_v6 }
 0x2e1   :  { %1251 = vmatprep.subr.bf16.mxu1 %v1412_v7 }
 0x2e4   :  { %1252 = vmatpush3.bf16.msra.mxu1 %v1413_v8 }
 0x2e5   :  { %1253 = vmatprep.subr.bf16.mxu1 %v1414_v26 }
 0x2e8   :  { %1254 = vmatpush3.bf16.msra.mxu1 %v1415_v27 }
 0x2e9   :  { %1255 = vmatprep.subr.bf16.mxu1 %v1416_v29 }
 0x2ec   :  { %1256 = vmatpush3.bf16.msra.mxu1 %v1417_v32 }
 0x2ed   :  { %1257 = vmatprep.subr.bf16.mxu1 %v1418_v33 }
 0x2f0   :  { %1258 = vmatpush3.bf16.msra.mxu1 %v1419_v34 }
 0x393   :  { %v658_v10 = vpop.f32.mrf.mxu1 }
 0x394   :  { %v659_v17 = vadd.f32 %v658_v10, %v539_v12 }
 0x395   :  { %v660_v13 = vpop.f32.mrf.mxu1 }
 0x396   :  { %v661_v15 = vadd.f32 %v660_v13, %v543_v11  ;;  %v667_v23 = vmax.f32 %v659_v17, 0.0 }
 0x397   :  { %v662_v14 = vpop.f32.mrf.mxu1 }
 0x398   :  { %v663_v16 = vadd.f32 %v662_v14, %v539_v12  ;;  %v668_v21 = vmax.f32 %v661_v15, 0.0 }
 0x399   :  { %v664_v18 = vpop.f32.mrf.mxu1 }
 0x39a   :  { %v665_v19 = vadd.f32 %v664_v18, %v543_v11  ;;  %v669_v20 = vmax.f32 %v663_v16, 0.0 }
 0x39c   :  { %v670_v22 = vmax.f32 %v665_v19, 0.0  ;;  %v671_v25 = vpack.c.bf16 %v669_v20, %v667_v23 }
 0x39e   :  { %v672_v24 = vpack.c.bf16 %v670_v22, %v668_v21 }
 0x3a0   :  { %905 = vmatprep.mubr.bf16.mxu0 %v672_v24 }
 0x3a1   :  { %906 = vmatmul.mubr.bf16.vlgmr.msra.gmra.mxu0 %v671_v25 }
 0x461   :  { %v907_v36 = vpop.f32.mrf.mxu0 }
 0x462   :  { %v908_v43 = vadd.f32 %v907_v36, %v708_v38 }
 0x463   :  { %v909_v39 = vpop.f32.mrf.mxu0 }
 0x464   :  { %v910_v41 = vadd.f32 %v909_v39, %v712_v37  ;;  %v916_v49 = vmax.f32 %v908_v43, 0.0 }
 0x465   :  { %v911_v40 = vpop.f32.mrf.mxu0 }
 0x466   :  { %v912_v42 = vadd.f32 %v911_v40, %v708_v38  ;;  %v917_v47 = vmax.f32 %v910_v41, 0.0 }
 0x467   :  { %v913_v44 = vpop.f32.mrf.mxu0 }
 0x468   :  { %v914_v45 = vadd.f32 %v913_v44, %v712_v37  ;;  %v918_v46 = vmax.f32 %v912_v42, 0.0 }
 0x46a   :  { %v919_v48 = vmax.f32 %v914_v45, 0.0  ;;  %v920_v51 = vpack.c.bf16 %v918_v46, %v916_v49 }
 0x46c   :  { %v921_v50 = vpack.c.bf16 %v919_v48, %v917_v47 }
 0x46e   :  { %1086 = vmatprep.mubr.bf16.mxu1 %v921_v50 }
 0x46f   :  { %1087 = vmatmul.mubr.bf16.vlgmr.msra.gmra.mxu1 %v920_v51 }
 0x52f   :  { %v1259_v30 = vpop.f32.mrf.mxu1 }
 0x531   :  { %v1260_v54 = vpop.f32.mrf.mxu1 }
 0x532   :  { %v1261_v55 = vadd.f32 %v1260_v54, %v1259_v30 }
 0x533   :  { %v1262_v56 = vpop.f32.mrf.mxu1 }
 0x534   :  { %v1089_v57 = vadd.f32 %v1261_v55, %v957_v53 }
 0x535   :  { %v1263_v58 = vpop.f32.mrf.mxu1 }
 0x536   :  { %1095 = vst [vmem:[#allocation16] sm:$0xff] %v1089_v57  ;;  %v1264_v59 = vadd.f32 %v1263_v58, %v1262_v56 }
 0x538   :  { %v1092_v60 = vadd.f32 %v1264_v59, %v957_v53 }
 0x53a   :  { %1096 = vst [vmem:[#allocation16 + $0x8] sm:$0xff] %v1092_v60 }
 0x53b   :  { %1591 = shalt.err (!%p1588_p2)
}
 0x53c   :  { %1108 = dma.vmem_to_hbm [thread:$0]  %s1103_s7, 256, %s1755_s8, [#allocation4], %s1613_s30, %s1613_s30, %s1614_s9  }
 0x53d   :  { %1610 = dma.done.wait [#allocation4], 256  }
 0x53e   :  { %1611 = vsyncadd [#allocation4], 4294967040 }
 0x53f   :  { %1112 = vsyncpa [#allocation3], 1 }
 0x540   :  { %1113 = vsyncpa [#allocation6], 1 }
 0x541   :  { %1114 = vsyncpa [#allocation9], 1 }
 0x542   :  { %1115 = vsyncpa [#allocation12], 1 }
 0x543   :  { %1116 = vsyncpa [#allocation15], 1 }
 0x544   :  { %1117 = vsyncpa [#allocation4], 1 }

</bundles_post_ra>
